<compile_context>
chip_gen: v5e
topology: v5e:2x2
jax: 0.10.0
libtpu: 0.0.40
codegen_flags: <defaults>
</compile_context>

<pallas_src>
import jax
import jax.numpy as jnp
from jax.experimental import pallas as pl
from jax.experimental.pallas import tpu as pltpu


# --------------------------------------------------------------------------- #
# Kernels
# --------------------------------------------------------------------------- #
def _mlp_resident_kernel(x_ref, w_fc_ref, w_proj_ref, o_ref):
    """Weights fully VMEM-resident; one M tile per grid step, no reduction axis."""
    wdt = w_fc_ref.dtype
    h = jnp.dot(x_ref[...].astype(wdt), w_fc_ref[...],
                preferred_element_type=jnp.float32)
    h = jnp.maximum(h, 0.0)
    h = h * h                                    # relu(x).square()
    o_ref[...] = jnp.dot(h.astype(wdt), w_proj_ref[...],
                         preferred_element_type=jnp.float32).astype(o_ref.dtype)


def _mlp_tiled_kernel_f32(x_ref, w_fc_ref, w_proj_ref, o_ref):
    """H-tiled fallback, f32 output: accumulate directly into o_ref (no scratch)."""
    k = pl.program_id(1)
    wdt = w_fc_ref.dtype
    h = jnp.dot(x_ref[...].astype(wdt), w_fc_ref[...],
                preferred_element_type=jnp.float32)
    h = jnp.maximum(h, 0.0)
    h = h * h
    p = jnp.dot(h.astype(wdt), w_proj_ref[...], preferred_element_type=jnp.float32)

    @pl.when(k == 0)
    def _first():
        o_ref[...] = p                           # assign, don't zero-then-add

    @pl.when(k > 0)
    def _rest():
        o_ref[...] = o_ref[...] + p


def _mlp_tiled_kernel_acc(x_ref, w_fc_ref, w_proj_ref, o_ref, acc_ref):
    """H-tiled fallback, non-f32 output: f32 accumulator scratch + final cast."""
    k = pl.program_id(1)
    wdt = w_fc_ref.dtype
    h = jnp.dot(x_ref[...].astype(wdt), w_fc_ref[...],
                preferred_element_type=jnp.float32)
    h = jnp.maximum(h, 0.0)
    h = h * h
    p = jnp.dot(h.astype(wdt), w_proj_ref[...], preferred_element_type=jnp.float32)

    @pl.when(k == 0)
    def _first():
        acc_ref[...] = p

    @pl.when(k > 0)
    def _rest():
        acc_ref[...] += p

    @pl.when(k == pl.num_programs(1) - 1)
    def _finalize():
        o_ref[...] = acc_ref[...].astype(o_ref.dtype)


# --------------------------------------------------------------------------- #
# Helpers
# --------------------------------------------------------------------------- #
def _round_up(v, m):
    return ((v + m - 1) // m) * m


def _vmem_budget_bytes():
    """Per-generation VMEM budget with headroom for Mosaic internal scratch."""
    cap = 64 * 1024 * 1024                       # safe default (v7x per-TC VMEM)
    try:
        info = pltpu.get_tpu_info()
        cap = int(getattr(info, "vmem_capacity_bytes", cap))
    except Exception:
        pass
    return int(cap * 0.85)                       # ~15% headroom


def _pick_divisor_tile(total, target, align):
    """Largest tile <= target that divides `total` and is a multiple of `align`."""
    if total <= target:
        return total
    t = (target // align) * align
    while t >= align:
        if total % t == 0:
            return t
        t -= align
    return total


def _choose_tm(M, target):
    """M tile: <= target, multiple of 8, and >=2 tiles when possible (v7x megacore)."""
    if M <= 8:
        return M
    tm = min(target, M)
    if tm >= M:                                  # would collapse to a single tile
        tm = pl.cdiv(pl.cdiv(M, 2), 8) * 8       # split into two 8-row-aligned tiles
    return tm


def prepare_weights(w_fc_t, w_proj_t, compute_dtype=jnp.bfloat16):
    """One-time weight preparation (do NOT call per step — cache the result).

    w_fc_t: [D, 4D], w_proj_t: [4D, D] (already transposed for x @ W).
    Casts to the compute dtype and zero-pads D and H up to multiples of 128 so
    the kernel's output stores are lane-dense and MXU tiles are full.
    Zero padding is exact: padded w_fc rows / w_proj rows & cols are zero.
    """
    D, H = w_fc_t.shape
    assert w_proj_t.shape == (H, D)
    Dp, Hp = _round_up(D, 128), _round_up(H, 128)
    w_fc_p = jnp.zeros((Dp, Hp), compute_dtype)
    w_fc_p = w_fc_p.at[:D, :H].set(w_fc_t.astype(compute_dtype))
    w_proj_p = jnp.zeros((Hp, Dp), compute_dtype)
    w_proj_p = w_proj_p.at[:H, :D].set(w_proj_t.astype(compute_dtype))
    return w_fc_p, w_proj_p


# --------------------------------------------------------------------------- #
# Forward
# --------------------------------------------------------------------------- #
def mlp_forward(x, w_fc, w_proj, *, tile_m=256, tile_h=1024):
    """x: [B, T, D]; w_fc: [Dp, Hp]; w_proj: [Hp, Dp] — prepared via prepare_weights.

    Weights should already be in the compute dtype (bf16) and lane-padded; that
    hoists the per-call cast/pad HBM traffic out of the hot path.
    """
    B, T, D = x.shape
    Dp, Hp = w_fc.shape
    assert w_proj.shape == (Hp, Dp) and Dp >= D
    out_dtype = x.dtype
    is_f32_out = jnp.dtype(out_dtype) == jnp.dtype(jnp.float32)

    M = B * T
    x2 = x.reshape(M, D)
    if Dp != D:                                  # lane-pad activations (exact: padded
        x2 = jnp.pad(x2, ((0, 0), (0, Dp - D)))  # w_fc rows are zero anyway)

    # --- M tiling (zero rows are exact: relu(0)^2 @ W = 0, sliced off below) ---
    tm = _choose_tm(M, tile_m)
    m_pad = pl.cdiv(M, tm) * tm
    if m_pad != M:
        x2 = jnp.pad(x2, ((0, m_pad - M), (0, 0)))
    m_tiles = m_pad // tm

    xb = jnp.dtype(x.dtype).itemsize
    cb = jnp.dtype(w_fc.dtype).itemsize
    ob = jnp.dtype(out_dtype).itemsize
    budget = _vmem_budget_bytes()

    def est_bytes(tH):
        return (2 * tm * Dp * xb                 # x tiles (double-buffered)
                + 2 * Dp * tH * cb               # w_fc buffers
                + 2 * tH * Dp * cb               # w_proj buffers
                + 2 * tm * Dp * ob               # output tiles
                + tm * tH * (4 + cb)             # h f32 intermediate + cast copy
                + tm * Dp * 4)                   # f32 2nd-matmul result / acc scratch

    resident = est_bytes(Hp) <= budget or Hp % 128 != 0

    if resident:
        grid = (m_tiles,)
        in_specs = [
            pl.BlockSpec((tm, Dp), lambda i: (i, 0)),
            pl.BlockSpec((Dp, Hp), lambda i: (0, 0)),   # constant index -> DMA once
            pl.BlockSpec((Hp, Dp), lambda i: (0, 0)),   # constant index -> DMA once
        ]
        out_specs = pl.BlockSpec((tm, Dp), lambda i: (i, 0))
        kernel, scratch = _mlp_resident_kernel, []
        dim_sem = ("parallel",)
        vmem_need = est_bytes(Hp)
        w_reads = 1
    else:
        # Very large model: keep H tiled, but with big tiles and the slimmer
        # init/accumulate path.  TODO(synk): add pipeline_mode=pl.Buffered(3) on the
        # weight specs if profiling still shows exposed weight DMA here.
        tH = _pick_divisor_tile(Hp, tile_h, 128)
        while tH > 128 and est_bytes(tH) > budget:
            nxt = _pick_divisor_tile(Hp, tH - 128, 128)
            if nxt >= tH:
                break
            tH = nxt
        grid = (m_tiles, Hp // tH)
        in_specs = [
            pl.BlockSpec((tm, Dp), lambda i, k: (i, 0)),
            pl.BlockSpec((Dp, tH), lambda i, k: (0, k)),
            pl.BlockSpec((tH, Dp), lambda i, k: (k, 0)),
        ]
        out_specs = pl.BlockSpec((tm, Dp), lambda i, k: (i, 0))
        if is_f32_out:
            kernel, scratch = _mlp_tiled_kernel_f32, []
        else:
            kernel, scratch = _mlp_tiled_kernel_acc, [pltpu.VMEM((tm, Dp), jnp.float32)]
        dim_sem = ("parallel", "arbitrary")
        vmem_need = est_bytes(tH)
        w_reads = m_tiles

    vmem_limit = int(max(budget, min(vmem_need, budget)))

    cost = pl.CostEstimate(
        flops=4 * M * Dp * Hp,                   # two matmuls: 2*M*Dp*Hp each
        transcendentals=0,
        bytes_accessed=(M * Dp * xb + w_reads * 2 * Dp * Hp * cb + M * Dp * ob),
    )

    out2 = pl.pallas_call(
        kernel,
        out_shape=jax.ShapeDtypeStruct((m_pad, Dp), out_dtype),
        grid_spec=pltpu.PrefetchScalarGridSpec(
            num_scalar_prefetch=0,
            grid=grid,
            in_specs=in_specs,
            out_specs=out_specs,
            scratch_shapes=scratch,
        ),
        compiler_params=pltpu.CompilerParams(
            dimension_semantics=dim_sem,
            vmem_limit_bytes=vmem_limit,
        ),
        cost_estimate=cost,
    )(x2, w_fc, w_proj)

    return out2[:M, :D].reshape(B, T, D)


# --------------------------------------------------------------------------- #
# Parameter init matching CastedLinear.reset_parameters / MLP.__init__
# --------------------------------------------------------------------------- #
def init_params(key, dim, dtype=jnp.float32):
    hdim = 4 * dim
    std = 0.5 * dim ** (-0.5)
    bound = (3.0 ** 0.5) * std
    k_fc, _ = jax.random.split(key)
    # PyTorch weight is [out, in]; we store the transpose [in, out] for x @ W.
    w_fc_t = jax.random.uniform(k_fc, (dim, hdim), dtype=dtype,
                                minval=-bound, maxval=bound)
    w_proj_t = jnp.zeros((hdim, dim), dtype=dtype)   # c_proj zero-initialized
    return w_fc_t, w_proj_t


if __name__ == "__main__":
    B, T, D = 2, 8, 128                          # hdim = 512, lane-aligned
    key = jax.random.PRNGKey(0)
    kx, kp, kw = jax.random.split(key, 3)
    x = jax.random.normal(kx, (B, T, D), dtype=jnp.float32)
    w_fc_t, w_proj_t = init_params(kp, D)

    # One-time weight prep (cast to bf16 + lane padding), hoisted out of the hot path.
    w_fc_c, w_proj_c = prepare_weights(w_fc_t, w_proj_t)

    # 1) Module-faithful case: c_proj is zero-initialized -> output must be 0.
    out0 = jax.block_until_ready(mlp_forward(x, w_fc_c, w_proj_c))
    assert out0.shape == (B, T, D)
    assert jnp.allclose(out0, 0.0)

    # 2) Non-trivial c_proj weights to exercise the full datapath.
    H = 4 * D
    std_p = 0.5 * H ** (-0.5)
    bound_p = (3.0 ** 0.5) * std_p
    w_proj_rand = jax.random.uniform(kw, (H, D), dtype=jnp.float32,
                                     minval=-bound_p, maxval=bound_p)
    w_fc_c2, w_proj_c2 = prepare_weights(w_fc_t, w_proj_rand)
    out = jax.block_until_ready(mlp_forward(x, w_fc_c2, w_proj_c2))

    # Reference with the same bf16-matmul / f32-accumulate recipe as the kernel.
    cd = jnp.bfloat16
    x2 = x.reshape(-1, D)
    h_ref = jnp.dot(x2.astype(cd), w_fc_t.astype(cd),
                    preferred_element_type=jnp.float32)
    h_ref = jnp.maximum(h_ref, 0.0) ** 2
    ref = jnp.dot(h_ref.astype(cd), w_proj_rand.astype(cd),
                  preferred_element_type=jnp.float32)
    ref = ref.reshape(B, T, D).astype(x.dtype)
    assert out.shape == (B, T, D)
    assert jnp.allclose(out, ref, atol=2e-2, rtol=2e-2), \
        float(jnp.max(jnp.abs(out - ref)))

    # 3) Un-aligned D (64) exercises the lane-padding path (padded to 128, sliced back).
    D2 = 64
    H2 = 4 * D2
    x3 = jax.random.normal(kx, (B, T, D2), dtype=jnp.float32)
    w_fc3, _ = init_params(kp, D2)
    bound_p2 = (3.0 ** 0.5) * 0.5 * H2 ** (-0.5)
    w_proj3 = jax.random.uniform(kw, (H2, D2), dtype=jnp.float32,
                                 minval=-bound_p2, maxval=bound_p2)
    wf3, wp3 = prepare_weights(w_fc3, w_proj3)
    out3 = jax.block_until_ready(mlp_forward(x3, wf3, wp3))
    h3 = jnp.maximum(jnp.dot(x3.reshape(-1, D2).astype(cd), w_fc3.astype(cd),
                             preferred_element_type=jnp.float32), 0.0) ** 2
    ref3 = jnp.dot(h3.astype(cd), w_proj3.astype(cd),
                   preferred_element_type=jnp.float32).reshape(B, T, D2).astype(x3.dtype)
    assert out3.shape == (B, T, D2)
    assert jnp.allclose(out3, ref3, atol=2e-2, rtol=2e-2), \
        float(jnp.max(jnp.abs(out3 - ref3)))

    print("KERNEL_OK")
</pallas_src>

<mosaic_0001>
module attributes {stable_mosaic.version = 11 : i64} {
  func.func @_mlp_resident_kernel(%arg0: i32, %arg1: memref<8x128xf32, #tpu.memory_space<vmem>>, %arg2: memref<128x512xbf16, #tpu.memory_space<vmem>>, %arg3: memref<512x128xbf16, #tpu.memory_space<vmem>>, %arg4: memref<8x128xf32, #tpu.memory_space<vmem>>) attributes {dimension_semantics = [#tpu.dimension_semantics<parallel>], iteration_bounds = array<i64: 2>, scalar_prefetch = 0 : i64, scratch_operands = 0 : i64, tpu.core_type = #tpu.core_type<tc>, window_params = [{transform_indices = @transform_0, window_bounds = array<i64: 8, 128>}, {pipeline_mode = #tpu.pipeline_mode<synchronous>, transform_indices = @transform_1, window_bounds = array<i64: 128, 512>}, {pipeline_mode = #tpu.pipeline_mode<synchronous>, transform_indices = @transform_2, window_bounds = array<i64: 512, 128>}, {transform_indices = @transform_3, window_bounds = array<i64: 8, 128>}]} {
    %c0 = arith.constant 0 : index
    %c0_0 = arith.constant 0 : index
    %0 = vector.load %arg1[%c0, %c0_0] : memref<8x128xf32, #tpu.memory_space<vmem>>, vector<8x128xf32>
    %1 = arith.truncf %0 : vector<8x128xf32> to vector<8x128xbf16>
    %c0_1 = arith.constant 0 : index
    %c0_2 = arith.constant 0 : index
    %2 = vector.load %arg2[%c0_1, %c0_2] : memref<128x512xbf16, #tpu.memory_space<vmem>>, vector<128x512xbf16>
    %cst = arith.constant dense<0.000000e+00> : vector<8x512xf32>
    %3 = tpu.matmul %1, %2, %cst {dimension_numbers = #tpu.dot_dimension_numbers<[1], [0], [0], [1], [0, 0, 1, 1], [], []>} : vector<8x128xbf16>, vector<128x512xbf16>, vector<8x512xf32> -> vector<8x512xf32>
    %cst_3 = arith.constant 0.000000e+00 : f32
    %4 = vector.broadcast %cst_3 : f32 to vector<8x512xf32>
    %5 = arith.maximumf %3, %4 : vector<8x512xf32>
    %6 = arith.mulf %5, %5 : vector<8x512xf32>
    %7 = arith.truncf %6 : vector<8x512xf32> to vector<8x512xbf16>
    %c0_4 = arith.constant 0 : index
    %c0_5 = arith.constant 0 : index
    %8 = vector.load %arg3[%c0_4, %c0_5] : memref<512x128xbf16, #tpu.memory_space<vmem>>, vector<512x128xbf16>
    %cst_6 = arith.constant dense<0.000000e+00> : vector<8x128xf32>
    %9 = tpu.matmul %7, %8, %cst_6 {dimension_numbers = #tpu.dot_dimension_numbers<[1], [0], [0], [1], [0, 0, 1, 1], [], []>} : vector<8x512xbf16>, vector<512x128xbf16>, vector<8x128xf32> -> vector<8x128xf32>
    %c0_7 = arith.constant 0 : index
    %c0_8 = arith.constant 0 : index
    %10 = vector.load %arg4[%c0_7, %c0_8] : memref<8x128xf32, #tpu.memory_space<vmem>>, vector<8x128xf32>
    tpu.vector_store %arg4[%c0_7, %c0_8], %9 {strides = array<i32>} : memref<8x128xf32, #tpu.memory_space<vmem>>, vector<8x128xf32>,
    return
  }
  func.func @transform_0(%arg0: i32) -> (i32, i32) {
    %c0_i32 = arith.constant 0 : i32
    %c0_i32_0 = arith.constant 0 : i32
    return %arg0, %c0_i32 : i32, i32
  }
  func.func @transform_1(%arg0: i32) -> (i32, i32) {
    %c0_i32 = arith.constant 0 : i32
    %c0_i32_0 = arith.constant 0 : i32
    %c0_i32_1 = arith.constant 0 : i32
    return %c0_i32, %c0_i32_0 : i32, i32
  }
  func.func @transform_2(%arg0: i32) -> (i32, i32) {
    %c0_i32 = arith.constant 0 : i32
    %c0_i32_0 = arith.constant 0 : i32
    %c0_i32_1 = arith.constant 0 : i32
    return %c0_i32, %c0_i32_0 : i32, i32
  }
  func.func @transform_3(%arg0: i32) -> (i32, i32) {
    %c0_i32 = arith.constant 0 : i32
    %c0_i32_0 = arith.constant 0 : i32
    return %arg0, %c0_i32 : i32, i32
  }
}

</mosaic_0001>

<bundles_post_ra>
// kernel: tpu_custom_call.1
= control target key start
LH: loop header
LB: loop body
LE: loop exit
PB: predicated region body
PF: predicated region fallthrough
CT: control target
= control target key end

     0   :  { %8 = vsyncpa [#allocation3], 0  ;;  %s1640_s0 = inlined_call_operand.hbm [shape: f32[16,128], index: 0, kind: input, shape index: {}]   ;;  %s1641_s1 = inlined_call_operand.hbm [shape: bf16[128,512], index: 1, kind: input, shape index: {}]   ;;  %s1642_s2 = inlined_call_operand.hbm [shape: bf16[512,128], index: 2, kind: input, shape index: {}]   ;;  %s1643_s3 = inlined_call_operand.hbm [shape: f32[16,128], index: 3, kind: output, shape index: {}]  }
   0x1   :  { %10 = vsyncpa [#allocation3 + $0x1], 0 }
   0x2   :  { %11 = vsyncpa [#allocation6], 0 }
   0x3   :  { %12 = vsyncpa [#allocation4], 0 }
   0x4   :  { %14 = vsyncpa [#allocation4 + $0x1], 0  ;;  %s1488_s12 = smov 0   ;;  %s1490_s13 = smov 0  }
   0x5   :  { %s1492_s14 = smov 0   ;;  %s1494_s15 = smov 0  }
   0x6 LB: > { %s130_s18 = sshll.u32 %s1641_s1, 4  ;;  %s1512_s19 = sadd.s32 4294967295, %s1460_s15   ;;  %s1460_s15 = sphi %s1494_s15, %s1654_s15   ;;  %s1456_s14 = sphi %s1492_s14, %s1653_s14   ;;  %s1452_s13 = sphi %s1490_s13, %s1652_s13   ;;  %s1448_s12 = sphi %s1488_s12, %s1651_s12   ;;  %s131_s18 = int_to_ptr.hbm [resolvable:$true] %s130_s18 }
   0x7   : > { %p894_p0 = scmp.ge.s32.totalorder %s1460_s15, 1  ;;  %p41_p1 = scmp.eq.s32.totalorder %s1512_s19, 0 }
   0x8   : > { %p119_p2 = scmp.lt.s32.totalorder %s1460_s15, 3  ;;  %s1462_s21 = smov [#allocation5]  }
   0x9   : > { %s132_s22 = sshll.u32 %s1462_s21, 4  ;;  %s144_s25 = sshll.u32 %s1642_s2, 4  ;;  %s133_s22 = int_to_ptr.vmem [resolvable:$true] %s132_s22  ;;  %s145_s25 = int_to_ptr.hbm [resolvable:$true] %s144_s25 }
   0xa   : > { %p1517_p3 = pnand %p894_p0, %p119_p2  ;;  %s1463_s26 = smov [#allocation7]  }
   0xb   : > { %s146_s27 = sshll.u32 %s1463_s26, 4  ;;  %s1464_s28 = smov 256   ;;  %s147_s27 = int_to_ptr.vmem [resolvable:$true] %s146_s27 }
   0xc   : > { %p1241_p4 = pneg %p1517_p3  ;;  %s1465_s29 = smov 16  }
   0xd   : > { %s1466_s30 = smov 64   ;;  %s1467_s4 = smov 4  }
   0xe   : > { %p1242_p6 = pnand %p1241_p4, %p41_p1  ;;  %s893_s5 = sadd.s32 4294967294, %s1460_s15  }
   0xf   : > { %s1531_s6 = sadd.s32 1, %s1460_s15   ;;  %s27_s8 = sadd.s32 1, %s1456_s14 }
  0x10   : > { %1244 = dma.hbm_to_vmem [thread:$0]  (!%p1242_p6), %s131_s18, 4096, %s133_s22, [#allocation6], %s1464_s28, %s1464_s28, %s1465_s29  }
  0x11   : > { %1247 = dma.hbm_to_vmem [thread:$0]  (!%p1242_p6), %s145_s25, 4096, %s147_s27, [#allocation6], %s1466_s30, %s1466_s30, %s1467_s4  }
  0x12   : > { %s24_s7 = ssub.s32 %s1460_s15, %s1531_s6  ;;  %p34_p8 = scmp.ne.s32.totalorder %s1456_s14, %s1452_s13 }
  0x13   : > { %p25_p7 = scmp.eq.s32.totalorder %s24_s7, 0  ;;  %p35_p9 = scmp.eq.s32.totalorder %s1460_s15, 0 }
  0x14   : > { %p40_p10 = scmp.ne.s32.totalorder %s1452_s13, %s1448_s12  ;;  %p106_p13 = scmp.eq.s32.totalorder %s1512_s19, 1 }
  0x15   : > { %s1542_s9 = scalar_select %p25_p7, %s1456_s14, %s27_s8  }
  0x16   : > { %p1544_p11 = por %p35_p9, %p34_p8  ;;  %p1550_p12 = por %p41_p1, %p40_p10 }
  0x17   : > { %p112_p0 = scmp.eq.s32.totalorder %s893_s5, 1  ;;  %p1258_p2 = scmp.lt.s32.totalorder %s1460_s15, 2 }
  0x18   : > { %s160_s16 = sand.u32 1, %s1456_s14   ;;  %p1557_p4 = por %p106_p13, %p34_p8 }
  0x19   : > { %p1561_p6 = por %p112_p0, %p40_p10  ;;  %s898_s21 = sshll.u32 %s160_s16, 3 }
  0x1a   : > { %s899_s22 = sshll.u32 %s1460_s15, 3  ;;  %s164_s26 = scalar_lea.vmem [#allocation2], %s898_s21 }
  0x1b   : > { %s168_s25 = scalar_lea.hbm %s1640_s0, %s899_s22  ;;  %s172_s27 = sshll.u32 %s164_s26, 4  ;;  %s173_s27 = int_to_ptr.vmem [resolvable:$true] %s172_s27 }
  0x1c   : > { %s170_s28 = sshll.u32 %s168_s25, 4  ;;  %p1571_p7 = pnand %p1258_p2, %p1544_p11  ;;  %s171_s28 = int_to_ptr.hbm [resolvable:$true] %s170_s28 }
  0x1d   : > { %s161_s30 = scalar_lea.sflag [#allocation3], %s160_s16  ;;  %s1360_s4 = sshra.s32 %s171_s28, 4  ;;  %s1361_s4 = int_to_ptr.hbm [resolvable:$true] %s1360_s4 }
  0x1e   : > { %s1362_s5 = scalar_lea.hbm %s1361_s4, 8  ;;  %p1364_p9 = pneg %p1571_p7 }
  0x1f   : > { %p1363_p8 = scmp.ne.s32.totalorder %s1361_s4, %s1362_s5  ;;  %s1367_s21 = scalar_lea.hbm %s1640_s0, 16 }
  0x20   : > { %p1368_p11 = scmp.lt.s32.totalorder %s1361_s4, %s1640_s0  ;;  %p1369_p0 = scmp.lt.s32.totalorder %s1367_s21, %s1362_s5 }
  0x21   : > { %p1365_p10 = pnand %p1364_p9, %p1363_p8 }
  0x22   : > { %p1370_p2 = por %p1369_p0, %p1368_p11 }
  0x23   : > { %p1366_p13 = pneg %p1365_p10 }
  0x25   : > { %p1371_p5 = pnand %p1370_p2, %p1366_p13 }
  0x27   : > { %1374 = shalt.err (!%p1371_p5)
}
  0x28   : > { %1251 = dma.hbm_to_vmem [thread:$0]  (!%p1571_p7), %s171_s28, 128, %s173_s27, %s161_s30  }
  0x29   : > { %181 = sbr.rel (%p1517_p3) target bundleno = 362 (0x16a), region = 32  ;;  %s1588_s16 = sand.u32 (!%p1517_p3), 1, %s1452_s13  }
  0x2a   : > { %s901_s23 = sshll.u32 (!%p1517_p3), %s1588_s16, 3  ;;  %s184_s24 = scalar_lea.sflag (!%p1517_p3), [#allocation3], %s1588_s16 }
  0x2b   : > { %s1594_s25 = scalar_lea.vmem (!%p1517_p3), [#allocation2], %s901_s23 }
  0x2e   : > { %1435 = dma.done.wait (%p1550_p12), %s184_s24, 128  }
  0x2f   : > { %1437 = vsyncadd (%p1550_p12), %s184_s24, 4294967168 }
  0x30   : > { %1439 = dma.done.wait (%p41_p1), [#allocation6], 8192  }
  0x31   : > { %1441 = vsyncadd (%p41_p1), [#allocation6], 4294959104  ;;  %v1027_v0 = vld [vmem:[#allocation5 + $0xe8] sm:$0xf]  ;;  %v1196_v1 = vld [vmem:[#allocation5 + $0xf4] sm:$0xf0] }
  0x32   : > { %v1194_v2 = vld [vmem:[#allocation5 + $0xec] sm:$0xf]  ;;  %v1028_v3 = vor.u32 %v1196_v1, %v1027_v0  ;;  %v1029_v4 = vld [vmem:[#allocation5 + $0xf8] sm:$0xf0]  ;;  %v1019_v5 = vld [vmem:[#allocation5 + $0xe0] sm:$0xf] }
  0x33   : > { %v1195_v6 = vld [vmem:[#allocation5 + $0xec] sm:$0xf0]  ;;  %v1032_v7 = vor.u32 %v1194_v2, %v1029_v4  ;;  %v1193_v9 = vld [vmem:[#allocation5 + $0xe4] sm:$0xf]  ;;  %v1021_v10 = vld [vmem:[#allocation5 + $0xf0] sm:$0xf0] }
  0x34   : > { %v1020_v8 = vor.u32 %v1195_v6, %v1019_v5  ;;  %v1011_v11 = vld [vmem:[#allocation5 + $0xc8] sm:$0xf]  ;;  %441 = vmatpush.bf16.msra.mxu2 %v1028_v3  ;;  %v1024_v12 = vor.u32 %v1193_v9, %v1021_v10  ;;  %v1192_v13 = vld [vmem:[#allocation5 + $0xd4] sm:$0xf0]  ;;  %v1190_v14 = vld [vmem:[#allocation5 + $0xcc] sm:$0xf] }
  0x35   : > { %v1013_v15 = vld [vmem:[#allocation5 + $0xd8] sm:$0xf0]  ;;  %454 = vmatpush.bf16.msra.mxu3 %v1032_v7  ;;  %v1012_v16 = vor.u32 %v1192_v13, %v1011_v11  ;;  %v1003_v18 = vld [vmem:[#allocation5 + $0xc0] sm:$0xf]  ;;  %v1191_v19 = vld [vmem:[#allocation5 + $0xcc] sm:$0xf0] }
  0x36   : > { %415 = vmatpush.bf16.msra.mxu0 %v1020_v8  ;;  %v1016_v17 = vor.u32 %v1190_v14, %v1013_v15  ;;  %v1189_v20 = vld [vmem:[#allocation5 + $0xc4] sm:$0xf]  ;;  %428 = vmatpush.bf16.msra.mxu1 %v1024_v12  ;;  %v1004_v21 = vor.u32 %v1191_v19, %v1003_v18  ;;  %v1005_v22 = vld [vmem:[#allocation5 + $0xd0] sm:$0xf0]  ;;  %v995_v23 = vld [vmem:[#allocation5 + $0xa8] sm:$0xf] }
  0x37   : > { %v1188_v24 = vld [vmem:[#allocation5 + $0xb4] sm:$0xf0]  ;;  %v1008_v25 = vor.u32 %v1189_v20, %v1005_v22  ;;  %v1186_v26 = vld [vmem:[#allocation5 + $0xac] sm:$0xf]  ;;  %v997_v27 = vld [vmem:[#allocation5 + $0xb8] sm:$0xf0] }
  0x38   : > { %v987_v28 = vld [vmem:[#allocation5 + $0xa0] sm:$0xf]  ;;  %442 = vmatpush.bf16.msra.mxu2 %v1012_v16  ;;  %v996_v29 = vor.u32 %v1188_v24, %v995_v23  ;;  %v1187_v30 = vld [vmem:[#allocation5 + $0xac] sm:$0xf0]  ;;  %v1185_v31 = vld [vmem:[#allocation5 + $0xa4] sm:$0xf]  ;;  %v1000_v33 = vor.u32 %v1186_v26, %v997_v27 }
  0x39   : > { %v989_v32 = vld [vmem:[#allocation5 + $0xb0] sm:$0xf0]  ;;  %455 = vmatpush.bf16.msra.mxu3 %v1016_v17  ;;  %v988_v34 = vor.u32 %v1187_v30, %v987_v28  ;;  %v979_v35 = vld [vmem:[#allocation5 + $0x88] sm:$0xf]  ;;  %v1184_v36 = vld [vmem:[#allocation5 + $0x94] sm:$0xf0] }
  0x3a   : > { %416 = vmatpush.bf16.msra.mxu0 %v1004_v21  ;;  %v1182_v37 = vld [vmem:[#allocation5 + $0x8c] sm:$0xf]  ;;  %429 = vmatpush.bf16.msra.mxu1 %v1008_v25  ;;  %v992_v38 = vor.u32 %v1185_v31, %v989_v32  ;;  %v981_v39 = vld [vmem:[#allocation5 + $0x98] sm:$0xf0]  ;;  %v971_v40 = vld [vmem:[#allocation5 + $0x80] sm:$0xf]  ;;  %v980_v44 = vor.u32 %v1184_v36, %v979_v35 }
  0x3b   : > { %v1183_v41 = vld [vmem:[#allocation5 + $0x8c] sm:$0xf0]  ;;  %v1181_v42 = vld [vmem:[#allocation5 + $0x84] sm:$0xf]  ;;  %v973_v43 = vld [vmem:[#allocation5 + $0x90] sm:$0xf0]  ;;  %v984_v45 = vor.u32 %v1182_v37, %v981_v39 }
  0x3c   : > { %443 = vmatpush.bf16.msra.mxu2 %v996_v29  ;;  %v972_v46 = vor.u32 %v1183_v41, %v971_v40  ;;  %v963_v47 = vld [vmem:[#allocation5 + $0x68] sm:$0xf]  ;;  %v1180_v48 = vld [vmem:[#allocation5 + $0x74] sm:$0xf0]  ;;  %v1178_v49 = vld [vmem:[#allocation5 + $0x6c] sm:$0xf]  ;;  %v976_v50 = vor.u32 %v1181_v42, %v973_v43 }
  0x3d   : > { %456 = vmatpush.bf16.msra.mxu3 %v1000_v33  ;;  %v965_v51 = vld [vmem:[#allocation5 + $0x78] sm:$0xf0]  ;;  %v955_v52 = vld [vmem:[#allocation5 + $0x60] sm:$0xf]  ;;  %v1179_v53 = vld [vmem:[#allocation5 + $0x6c] sm:$0xf0]  ;;  %v964_v56 = vor.u32 %v1180_v48, %v963_v47 }
  0x3e   : > { %417 = vmatpush.bf16.msra.mxu0 %v988_v34  ;;  %430 = vmatpush.bf16.msra.mxu1 %v992_v38  ;;  %v1177_v54 = vld [vmem:[#allocation5 + $0x64] sm:$0xf]  ;;  %v957_v55 = vld [vmem:[#allocation5 + $0x70] sm:$0xf0]  ;;  %v968_v57 = vor.u32 %v1178_v49, %v965_v51  ;;  %v956_v58 = vor.u32 %v1179_v53, %v955_v52  ;;  %v947_v59 = vld [vmem:[#allocation5 + $0x48] sm:$0xf] }
  0x3f   : > { %v1176_v60 = vld [vmem:[#allocation5 + $0x54] sm:$0xf0]  ;;  %v1174_v61 = vld [vmem:[#allocation5 + $0x4c] sm:$0xf]  ;;  %v960_v62 = vor.u32 %v1177_v54, %v957_v55  ;;  %v949_v63 = vld [vmem:[#allocation5 + $0x58] sm:$0xf0] }
  0x40   : > { %444 = vmatpush.bf16.msra.mxu2 %v980_v44  ;;  %v939_v0 = vld [vmem:[#allocation5 + $0x40] sm:$0xf]  ;;  %v1175_v1 = vld [vmem:[#allocation5 + $0x4c] sm:$0xf0]  ;;  %v1173_v2 = vld [vmem:[#allocation5 + $0x44] sm:$0xf]  ;;  %v948_v4 = vor.u32 %v1176_v60, %v947_v59  ;;  %v952_v5 = vor.u32 %v1174_v61, %v949_v63 }
  0x41   : > { %457 = vmatpush.bf16.msra.mxu3 %v984_v45  ;;  %v941_v3 = vld [vmem:[#allocation5 + $0x50] sm:$0xf0]  ;;  %v940_v6 = vor.u32 %v1175_v1, %v939_v0  ;;  %v931_v7 = vld [vmem:[#allocation5 + $0x28] sm:$0xf]  ;;  %v1172_v8 = vld [vmem:[#allocation5 + $0x34] sm:$0xf0] }
  0x42   : > { %418 = vmatpush.bf16.msra.mxu0 %v972_v46  ;;  %431 = vmatpush.bf16.msra.mxu1 %v976_v50  ;;  %v1170_v9 = vld [vmem:[#allocation5 + $0x2c] sm:$0xf]  ;;  %v944_v10 = vor.u32 %v1173_v2, %v941_v3  ;;  %v933_v11 = vld [vmem:[#allocation5 + $0x38] sm:$0xf0]  ;;  %v923_v12 = vld [vmem:[#allocation5 + $0x20] sm:$0xf]  ;;  %v932_v16 = vor.u32 %v1172_v8, %v931_v7 }
  0x43   : > { %v1171_v13 = vld [vmem:[#allocation5 + $0x2c] sm:$0xf0]  ;;  %v1169_v14 = vld [vmem:[#allocation5 + $0x24] sm:$0xf]  ;;  %v925_v15 = vld [vmem:[#allocation5 + $0x30] sm:$0xf0]  ;;  %v936_v17 = vor.u32 %v1170_v9, %v933_v11 }
  0x44   : > { %445 = vmatpush.bf16.msra.mxu2 %v964_v56  ;;  %v924_v18 = vor.u32 %v1171_v13, %v923_v12  ;;  %v915_v19 = vld [vmem:[#allocation5 + $0x8] sm:$0xf]  ;;  %v1168_v20 = vld [vmem:[#allocation5 + $0x14] sm:$0xf0]  ;;  %v1166_v21 = vld [vmem:[#allocation5 + $0xc] sm:$0xf]  ;;  %v928_v22 = vor.u32 %v1169_v14, %v925_v15 }
  0x45   : > { %458 = vmatpush.bf16.msra.mxu3 %v968_v57  ;;  %v917_v23 = vld [vmem:[#allocation5 + $0x18] sm:$0xf0]  ;;  %v907_v24 = vld [vmem:[#allocation5] sm:$0xf]  ;;  %v1167_v25 = vld [vmem:[#allocation5 + $0xc] sm:$0xf0]  ;;  %v916_v28 = vor.u32 %v1168_v20, %v915_v19 }
  0x46   : > { %419 = vmatpush.bf16.msra.mxu0 %v956_v58  ;;  %432 = vmatpush.bf16.msra.mxu1 %v960_v62  ;;  %v1165_v26 = vld [vmem:[#allocation5 + $0x4] sm:$0xf]  ;;  %v909_v27 = vld [vmem:[#allocation5 + $0x10] sm:$0xf0]  ;;  %v920_v30 = vor.u32 %v1166_v21, %v917_v23  ;;  %v908_v31 = vor.u32 %v1167_v25, %v907_v24  ;;  %v1204_v33 = vld [vmem:[#allocation7 + $0x38] sm:$0xff]  ;;  %s1162_s20 = sshll.u32 %s1512_s19, 3 }
  0x47   : > { %v221_v29 = vld [vmem:[%s1594_s25] sm:$0xff]  ;;  %v912_v32 = vor.u32 %v1165_v26, %v909_v27  ;;  %v1202_v42 = vld [vmem:[#allocation7 + $0x28] sm:$0xff]  ;;  %v1201_v46 = vld [vmem:[#allocation7 + $0x20] sm:$0xff]  ;;  %s799_s27 = scalar_lea.hbm %s1643_s3, %s1162_s20  ;;  %s220_s28 = scalar_lea.vmem [#allocation8], %s901_s23 }
  0x48   : > { %446 = vmatpush.bf16.msra.mxu2 %v948_v4  ;;  %v222_v34 = vpack.c.bf16 %v221_v29, %v221_v29  ;;  %v1212_v35 = vld [vmem:[#allocation7 + $0x78] sm:$0xff]  ;;  %v1203_v38 = vld [vmem:[#allocation7 + $0x30] sm:$0xff]  ;;  %v1210_v43 = vld [vmem:[#allocation7 + $0x68] sm:$0xff]  ;;  %s801_s29 = sshll.u32 %s220_s28, 4  ;;  %s803_s30 = sshll.u32 %s799_s27, 4  ;;  %s802_s29 = int_to_ptr.vmem [resolvable:$true] %s801_s29  ;;  %s804_s30 = int_to_ptr.hbm [resolvable:$true] %s803_s30 }
  0x49   : > { %459 = vmatpush.bf16.msra.mxu3 %v952_v5  ;;  %v1220_v36 = vld [vmem:[#allocation7 + $0xb8] sm:$0xff]  ;;  %v1211_v39 = vld [vmem:[#allocation7 + $0x70] sm:$0xff]  ;;  %v1218_v44 = vld [vmem:[#allocation7 + $0xa8] sm:$0xff]  ;;  %s789_s19 = scalar_lea.sflag [#allocation4], %s1588_s16  ;;  %s1404_s4 = sshra.s32 %s804_s30, 4  ;;  %s1405_s4 = int_to_ptr.hbm [resolvable:$true] %s1404_s4 }
  0x4a   : > { %420 = vmatpush.bf16.msra.mxu0 %v940_v6  ;;  %433 = vmatpush.bf16.msra.mxu1 %v944_v10  ;;  %v1228_v37 = vld [vmem:[#allocation7 + $0xf8] sm:$0xff]  ;;  %v1219_v40 = vld [vmem:[#allocation7 + $0xb0] sm:$0xff]  ;;  %v1226_v45 = vld [vmem:[#allocation7 + $0xe8] sm:$0xff]  ;;  %s1406_s5 = scalar_lea.hbm %s1405_s4, 8  ;;  %s1410_s21 = scalar_lea.hbm %s1643_s3, 16 }
  0x4b   : > { %v1227_v41 = vld [vmem:[#allocation7 + $0xf0] sm:$0xff]  ;;  %v1209_v47 = vld [vmem:[#allocation7 + $0x60] sm:$0xff]  ;;  %v1200_v50 = vld [vmem:[#allocation7 + $0x18] sm:$0xff]  ;;  %p1407_p1 = scmp.ne.s32.totalorder %s1405_s4, %s1406_s5  ;;  %p1411_p12 = scmp.lt.s32.totalorder %s1405_s4, %s1643_s3 }
  0x4c   : > { %447 = vmatpush.bf16.msra.mxu2 %v932_v16  ;;  %v1217_v48 = vld [vmem:[#allocation7 + $0xa0] sm:$0xff]  ;;  %v1208_v51 = vld [vmem:[#allocation7 + $0x58] sm:$0xff]  ;;  %v1199_v54 = vld [vmem:[#allocation7 + $0x10] sm:$0xff]  ;;  %p1412_p7 = scmp.lt.s32.totalorder %s1410_s21, %s1406_s5 }
  0x4d   : > { %460 = vmatpush.bf16.msra.mxu3 %v936_v17  ;;  %v1225_v49 = vld [vmem:[#allocation7 + $0xe0] sm:$0xff]  ;;  %v1216_v52 = vld [vmem:[#allocation7 + $0x98] sm:$0xff]  ;;  %v1207_v55 = vld [vmem:[#allocation7 + $0x50] sm:$0xff]  ;;  %p1408_p3 = pnand %p1407_p1, %p1557_p4 }
  0x4e   : > { %421 = vmatpush.bf16.msra.mxu0 %v924_v18  ;;  %434 = vmatpush.bf16.msra.mxu1 %v928_v22  ;;  %v1224_v53 = vld [vmem:[#allocation7 + $0xd8] sm:$0xff]  ;;  %v1215_v56 = vld [vmem:[#allocation7 + $0x90] sm:$0xff]  ;;  %v1198_v58 = vld [vmem:[#allocation7 + $0x8] sm:$0xff]  ;;  %p1413_p8 = por %p1412_p7, %p1411_p12 }
  0x4f   : > { %v1223_v57 = vld [vmem:[#allocation7 + $0xd0] sm:$0xff]  ;;  %v1206_v59 = vld [vmem:[#allocation7 + $0x48] sm:$0xff]  ;;  %v1197_v62 = vld [vmem:[#allocation7] sm:$0xff]  ;;  %p1409_p5 = pneg %p1408_p3 }
  0x50   : > { %448 = vmatpush.bf16.msra.mxu2 %v916_v28  ;;  %v1214_v60 = vld [vmem:[#allocation7 + $0x88] sm:$0xff]  ;;  %v1205_v63 = vld [vmem:[#allocation7 + $0x40] sm:$0xff] }
  0x51   : > { %461 = vmatpush.bf16.msra.mxu3 %v920_v30  ;;  %v1222_v61 = vld [vmem:[#allocation7 + $0xc8] sm:$0xff]  ;;  %v1213_v0 = vld [vmem:[#allocation7 + $0x80] sm:$0xff]  ;;  %p1414_p9 = pnand %p1413_p8, %p1409_p5 }
  0x52   : > { %422 = vmatpush.bf16.msra.mxu0 %v908_v31  ;;  %435 = vmatpush.bf16.msra.mxu1 %v912_v32  ;;  %v1221_v1 = vld [vmem:[#allocation7 + $0xc0] sm:$0xff] }
  0x53   : > { %449 = vmatmul.bf16.vlgmr.msra.gmra.mxu2 %v222_v34 }
  0x54   : > { %462 = vmatmul.bf16.vlgmr.msra.gmra.mxu3 %v222_v34  ;;  %761 = vmatpush.bf16.msrb.mxu2 %v1220_v36 }
  0x55   : > { %423 = vmatmul.bf16.vlgmr.msra.gmra.mxu0 %v222_v34  ;;  %436 = vmatmul.bf16.vlgmr.msra.gmra.mxu1 %v222_v34 }
  0x56   : > { %735 = vmatpush.bf16.msrb.mxu0 %v1204_v33  ;;  %748 = vmatpush.bf16.msrb.mxu1 %v1212_v35 }
  0x57   : > { %774 = vmatpush.bf16.msrb.mxu3 %v1228_v37 }
  0x58   : > { %762 = vmatpush.bf16.msrb.mxu2 %v1219_v40 }
  0x5a   : > { %736 = vmatpush.bf16.msrb.mxu0 %v1203_v38  ;;  %749 = vmatpush.bf16.msrb.mxu1 %v1211_v39 }
  0x5b   : > { %775 = vmatpush.bf16.msrb.mxu3 %v1227_v41 }
  0x5c   : > { %763 = vmatpush.bf16.msrb.mxu2 %v1218_v44 }
  0x5e   : > { %737 = vmatpush.bf16.msrb.mxu0 %v1202_v42  ;;  %750 = vmatpush.bf16.msrb.mxu1 %v1210_v43 }
  0x5f   : > { %776 = vmatpush.bf16.msrb.mxu3 %v1226_v45 }
  0x60   : > { %764 = vmatpush.bf16.msrb.mxu2 %v1217_v48 }
  0x62   : > { %738 = vmatpush.bf16.msrb.mxu0 %v1201_v46  ;;  %751 = vmatpush.bf16.msrb.mxu1 %v1209_v47 }
  0x63   : > { %777 = vmatpush.bf16.msrb.mxu3 %v1225_v49 }
  0x64   : > { %765 = vmatpush.bf16.msrb.mxu2 %v1216_v52 }
  0x66   : > { %739 = vmatpush.bf16.msrb.mxu0 %v1200_v50  ;;  %752 = vmatpush.bf16.msrb.mxu1 %v1208_v51 }
  0x67   : > { %778 = vmatpush.bf16.msrb.mxu3 %v1224_v53 }
  0x68   : > { %766 = vmatpush.bf16.msrb.mxu2 %v1215_v56 }
  0x6a   : > { %740 = vmatpush.bf16.msrb.mxu0 %v1199_v54  ;;  %753 = vmatpush.bf16.msrb.mxu1 %v1207_v55 }
  0x6b   : > { %779 = vmatpush.bf16.msrb.mxu3 %v1223_v57 }
  0x6c   : > { %767 = vmatpush.bf16.msrb.mxu2 %v1214_v60 }
  0x6e   : > { %741 = vmatpush.bf16.msrb.mxu0 %v1198_v58  ;;  %754 = vmatpush.bf16.msrb.mxu1 %v1206_v59 }
  0x6f   : > { %780 = vmatpush.bf16.msrb.mxu3 %v1222_v61 }
  0x70   : > { %768 = vmatpush.bf16.msrb.mxu2 %v1213_v0 }
  0x72   : > { %742 = vmatpush.bf16.msrb.mxu0 %v1197_v62  ;;  %755 = vmatpush.bf16.msrb.mxu1 %v1205_v63 }
  0x73   : > { %781 = vmatpush.bf16.msrb.mxu3 %v1221_v1 }
  0xd2   : > { %v424_v2 = vpop.f32.mrf.mxu0  ;;  %v437_v4 = vpop.f32.mrf.mxu1 }
  0xd3   : > { %v467_v3 = vmax.f32 %v424_v2, 0.0  ;;  %v468_v5 = vmax.f32 %v437_v4, 0.0 }
  0xd5   : > { %v471_v6 = vmul.f32 %v467_v3, %v467_v3  ;;  %v472_v7 = vmul.f32 %v468_v5, %v468_v5 }
  0xd6   : > { %v450_v9 = vpop.f32.mrf.mxu2 }
  0xd7   : > { %v475_v8 = vpack.c.bf16 %v471_v6, %v471_v6  ;;  %v476_v10 = vpack.c.bf16 %v472_v7, %v472_v7  ;;  %v469_v11 = vmax.f32 %v450_v9, 0.0  ;;  %v463_v12 = vpop.f32.mrf.mxu3 }
  0xd8   : > { %v470_v13 = vmax.f32 %v463_v12, 0.0 }
  0xd9   : > { %743 = vmatmul.bf16.vlgmr.msrb.gmra.mxu0 %v475_v8  ;;  %v473_v14 = vmul.f32 %v469_v11, %v469_v11  ;;  %756 = vmatmul.bf16.vlgmr.msrb.gmra.mxu1 %v476_v10 }
  0xda   : > { %v426_v15 = vpop.f32.mrf.mxu0  ;;  %v474_v16 = vmul.f32 %v470_v13, %v470_v13  ;;  %v439_v17 = vpop.f32.mrf.mxu1 }
  0xdb   : > { %v477_v18 = vpack.c.bf16 %v473_v14, %v473_v14 }
  0xdc   : > { %v478_v19 = vpack.c.bf16 %v474_v16, %v474_v16 }
  0xdd   : > { %769 = vmatmul.bf16.vlgmr.msrb.gmra.mxu2 %v477_v18 }
  0xde   : > { %782 = vmatmul.bf16.vlgmr.msrb.gmra.mxu3 %v478_v19  ;;  %v452_v20 = vpop.f32.mrf.mxu2 }
  0xdf   : > { %v465_v21 = vpop.f32.mrf.mxu3 }
 0x156   : > { %v744_v22 = vpop.f32.mrf.mxu0  ;;  %v757_v23 = vpop.f32.mrf.mxu1 }
 0x157   : > { %v758_v24 = vadd.f32 %v757_v23, %v744_v22 }
 0x15e   : > { %v746_v25 = vpop.f32.mrf.mxu0  ;;  %v759_v26 = vpop.f32.mrf.mxu1 }
 0x160   : > { %v770_v27 = vpop.f32.mrf.mxu2 }
 0x161   : > { %v771_v28 = vadd.f32 %v770_v27, %v758_v24  ;;  %v783_v29 = vpop.f32.mrf.mxu3 }
 0x163   : > { %v784_v30 = vadd.f32 %v783_v29, %v771_v28 }
 0x165   : > { %787 = vst [vmem:[%s220_s28] sm:$0xff] %v784_v30 }
 0x166   : > { %1417 = shalt.err (!%p1414_p9)
}
 0x167   : > { %1239 = dma.vmem_to_hbm [thread:$0]  (%p1557_p4), %s802_s29, 128, %s804_s30, %s789_s19  }
 0x168   : > { %v772_v31 = vpop.f32.mrf.mxu2 }
 0x169   : > { %v785_v32 = vpop.f32.mrf.mxu3 }
 0x16a PF: > { %s815_s16 = sand.u32 1, %s1448_s12   ;;  %p1650_p10 = scmp.ge.s32.totalorder %s1460_s15, 2 }
 0x16b   : > { %s816_s23 = scalar_lea.sflag [#allocation4], %s815_s16 }
 0x16c   : > { %p1253_p13 = pnand %p1650_p10, %p1561_p6 }
 0x16e   : > { %p1254_p11 = pneg %p1253_p13 }
 0x170   : > { %1443 = dma.done.wait (%p1254_p11), %s816_s23, 128  }
 0x171   : > { %1445 = vsyncadd (%p1254_p11), %s816_s23, 4294967168  ;;  %p17_p4 = scmp.ge.s32.totalorder %s1531_s6, 4   ;;  %s1651_s12 = smov %s1452_s13 }
 0x172   : > { %s1652_s13 = smov %s1456_s14  ;;  %s1653_s14 = smov %s1542_s9 }
 0x173   : > { %s1654_s15 = smov %s1531_s6  ;;  %19 = sbr.rel (!%p17_p4) target bundleno = 6 (0x6), region = 85 }
 0x178   :  { %822 = vsyncpa [#allocation3], 1 }
 0x179   :  { %824 = vsyncpa [#allocation3 + $0x1], 1 }
 0x17a   :  { %825 = vsyncpa [#allocation6], 1 }
 0x17b   :  { %826 = vsyncpa [#allocation4], 1 }
 0x17c   :  { %828 = vsyncpa [#allocation4 + $0x1], 1 }

</bundles_post_ra>
